<compile_context>
chip_gen: v5e
topology: v5e:2x2
jax: 0.10.0
libtpu: 0.0.40
codegen_flags: <defaults>
</compile_context>

<pallas_src>
import jax
import jax.numpy as jnp
from jax.experimental import pallas as pl
from jax.experimental.pallas import tpu as pltpu

LN_EPS = 1e-5


# ---------------------------------------------------------------------------
# Fused kernel: LayerNorm(row tile) @ W + b, all inside VMEM.
# ---------------------------------------------------------------------------
def _prenorm_linear_kernel(x_ref, g_ref, b_ref, w_ref, bias_ref, o_ref):
    # ---- LayerNorm over the last (lane) axis, f32 statistics ----
    x = x_ref[...].astype(jnp.float32)                          # (tm, D_in)
    mean = jnp.mean(x, axis=-1, keepdims=True)
    centered = x - mean
    var = jnp.mean(centered * centered, axis=-1, keepdims=True)  # biased (torch)
    inv = jax.lax.rsqrt(var + LN_EPS)
    y = centered * inv
    y = y * g_ref[...].astype(jnp.float32) + b_ref[...].astype(jnp.float32)

    # ---- fn = Linear(D_in, D_out); normalized tile never leaves VMEM ----
    acc = jnp.dot(y.astype(w_ref.dtype), w_ref[...],
                  preferred_element_type=jnp.float32)            # (tm, D_out)
    acc = acc + bias_ref[...].astype(jnp.float32)
    o_ref[...] = acc.astype(o_ref.dtype)


# ---------------------------------------------------------------------------
# Tile-size selection: biggest row tile that fits a conservative VMEM budget
# (double-buffered x/out tiles + resident weight), sublane aligned.
# ---------------------------------------------------------------------------
def _pick_tile_rows(n_rows, d_in, d_out, itemsize, w_itemsize,
                    *, max_rows=1024, vmem_budget=20 * 1024 * 1024):
    sublane = 8 if itemsize >= 4 else 16
    weight_bytes = 2 * d_in * d_out * w_itemsize          # conservative: 2 bufs
    per_row_bytes = 2 * (d_in + d_out) * itemsize          # x + out, 2 bufs each
    budget = max(vmem_budget - weight_bytes, per_row_bytes * sublane)
    tm = min(max_rows, budget // per_row_bytes, n_rows)
    tm = max(sublane, (int(tm) // sublane) * sublane)
    return tm


# ---------------------------------------------------------------------------
# PreNorm forward: fn(LayerNorm(x)) with fn = Linear(D_in, D_out), fully fused.
# ---------------------------------------------------------------------------
def prenorm_linear_pallas(x, ln_gamma, ln_beta, weight, bias, *, tile_rows=None):
    """x: (B, S, D_in); weight: (D_in, D_out); bias: (D_out,)."""
    B, S, D_in = x.shape
    D_out = weight.shape[1]
    R = B * S
    x2d = x.reshape(R, D_in)

    itemsize = jnp.dtype(x.dtype).itemsize
    w_itemsize = jnp.dtype(weight.dtype).itemsize
    sublane = 8 if itemsize >= 4 else 16

    if tile_rows is None:
        tile_rows = _pick_tile_rows(R, D_in, D_out, itemsize, w_itemsize)
    tile_rows = max(sublane, (int(tile_rows) // sublane) * sublane)

    # Pad rows so the grid divides evenly; padded rows are sliced off below
    # (LayerNorm of an all-zero row is finite thanks to eps, so no NaNs).
    R_pad = ((R + tile_rows - 1) // tile_rows) * tile_rows
    if R_pad != R:
        x2d = jnp.pad(x2d, ((0, R_pad - R), (0, 0)))

    g2d = ln_gamma.reshape(1, D_in)
    b2d = ln_beta.reshape(1, D_in)
    bias2d = bias.reshape(1, D_out)

    grid = (R_pad // tile_rows,)

    cost = pl.CostEstimate(
        flops=2 * R_pad * D_in * D_out,
        transcendentals=0,
        bytes_accessed=int((R_pad * D_in + R_pad * D_out) * itemsize
                           + D_in * D_out * w_itemsize),
    )

    out2d = pl.pallas_call(
        _prenorm_linear_kernel,
        out_shape=jax.ShapeDtypeStruct((R_pad, D_out), x.dtype),
        grid_spec=pltpu.PrefetchScalarGridSpec(
            num_scalar_prefetch=0,
            grid=grid,
            in_specs=[
                pl.BlockSpec((tile_rows, D_in), lambda i: (i, 0)),   # x row tile
                pl.BlockSpec((1, D_in), lambda i: (0, 0)),           # gamma (resident)
                pl.BlockSpec((1, D_in), lambda i: (0, 0)),           # beta  (resident)
                pl.BlockSpec((D_in, D_out), lambda i: (0, 0)),       # weight (resident)
                pl.BlockSpec((1, D_out), lambda i: (0, 0)),          # bias  (resident)
            ],
            out_specs=pl.BlockSpec((tile_rows, D_out), lambda i: (i, 0)),
        ),
        compiler_params=pltpu.CompilerParams(
            dimension_semantics=("parallel",),          # row axis -> megacore on v7x
            vmem_limit_bytes=32 * 1024 * 1024,          # safe on v5e/v6e/v7x
        ),
        cost_estimate=cost,
    )(x2d, g2d, b2d, weight, bias2d)

    if R_pad != R:
        out2d = out2d[:R]
    return out2d.reshape(B, S, D_out)


if __name__ == "__main__":
    # Small shapes; D=128 keeps the output lane-dense (full 128-lane stores).
    B, S, D = 2, 64, 128

    key = jax.random.PRNGKey(0)
    kx, kg, kb, kw, kbias = jax.random.split(key, 5)

    x = jax.random.normal(kx, (B, S, D), dtype=jnp.float32)

    # LayerNorm affine params (perturbed so the affine path is exercised).
    ln_gamma = 1.0 + 0.1 * jax.random.normal(kg, (D,), dtype=jnp.float32)
    ln_beta = 0.1 * jax.random.normal(kb, (D,), dtype=jnp.float32)

    # fn = Linear(D, D) parameters.
    w = jax.random.normal(kw, (D, D), dtype=jnp.float32) / jnp.sqrt(D)
    bias = 0.1 * jax.random.normal(kbias, (D,), dtype=jnp.float32)

    # tile_rows=32 -> grid=(4,): exercises row tiling + resident-weight reuse.
    out = prenorm_linear_pallas(x, ln_gamma, ln_beta, w, bias, tile_rows=32)
    out = jax.block_until_ready(out)

    # Reference: plain JAX, same semantics as torch LayerNorm + Linear.
    x32 = x.astype(jnp.float32)
    mean = jnp.mean(x32, axis=-1, keepdims=True)
    var = jnp.mean((x32 - mean) ** 2, axis=-1, keepdims=True)
    ref_norm = (x32 - mean) / jnp.sqrt(var + LN_EPS) * ln_gamma + ln_beta
    ref = ref_norm @ w + bias

    assert out.shape == (B, S, D)
    assert jnp.allclose(out, ref, atol=1e-4, rtol=1e-4), "mismatch vs reference"

    print("KERNEL_OK")
</pallas_src>

<mosaic_0001>
module attributes {stable_mosaic.version = 11 : i64} {
  func.func @_prenorm_linear_kernel(%arg0: i32, %arg1: memref<32x128xf32, #tpu.memory_space<vmem>>, %arg2: memref<1x128xf32, #tpu.memory_space<vmem>>, %arg3: memref<1x128xf32, #tpu.memory_space<vmem>>, %arg4: memref<128x128xf32, #tpu.memory_space<vmem>>, %arg5: memref<1x128xf32, #tpu.memory_space<vmem>>, %arg6: memref<32x128xf32, #tpu.memory_space<vmem>>) attributes {dimension_semantics = [#tpu.dimension_semantics<parallel>], iteration_bounds = array<i64: 4>, scalar_prefetch = 0 : i64, scratch_operands = 0 : i64, tpu.core_type = #tpu.core_type<tc>, window_params = [{transform_indices = @transform_0, window_bounds = array<i64: 32, 128>}, {pipeline_mode = #tpu.pipeline_mode<synchronous>, transform_indices = @transform_1, window_bounds = array<i64: 1, 128>}, {pipeline_mode = #tpu.pipeline_mode<synchronous>, transform_indices = @transform_2, window_bounds = array<i64: 1, 128>}, {pipeline_mode = #tpu.pipeline_mode<synchronous>, transform_indices = @transform_3, window_bounds = array<i64: 128, 128>}, {pipeline_mode = #tpu.pipeline_mode<synchronous>, transform_indices = @transform_4, window_bounds = array<i64: 1, 128>}, {transform_indices = @transform_5, window_bounds = array<i64: 32, 128>}]} {
    %c0 = arith.constant 0 : index
    %c0_0 = arith.constant 0 : index
    %0 = vector.load %arg1[%c0, %c0_0] : memref<32x128xf32, #tpu.memory_space<vmem>>, vector<32x128xf32>
    %cst = arith.constant dense<0.000000e+00> : vector<32xf32>
    %1 = vector.multi_reduction <add>, %0, %cst [1] : vector<32x128xf32> to vector<32xf32>
    %2 = vector.shape_cast %1 : vector<32xf32> to vector<32x1xf32>
    %cst_1 = arith.constant 1.280000e+02 : f32
    %3 = vector.broadcast %cst_1 : f32 to vector<32x1xf32>
    %4 = arith.divf %2, %3 : vector<32x1xf32>
    %5 = vector.broadcast %4 : vector<32x1xf32> to vector<32x128xf32>
    %6 = arith.subf %0, %5 : vector<32x128xf32>
    %7 = arith.mulf %6, %6 : vector<32x128xf32>
    %cst_2 = arith.constant dense<0.000000e+00> : vector<32xf32>
    %8 = vector.multi_reduction <add>, %7, %cst_2 [1] : vector<32x128xf32> to vector<32xf32>
    %9 = vector.shape_cast %8 : vector<32xf32> to vector<32x1xf32>
    %cst_3 = arith.constant 1.280000e+02 : f32
    %10 = vector.broadcast %cst_3 : f32 to vector<32x1xf32>
    %11 = arith.divf %9, %10 : vector<32x1xf32>
    %cst_4 = arith.constant 9.99999974E-6 : f32
    %12 = vector.broadcast %cst_4 : f32 to vector<32x1xf32>
    %13 = arith.addf %11, %12 : vector<32x1xf32>
    %14 = math.rsqrt %13 : vector<32x1xf32>
    %15 = vector.broadcast %14 : vector<32x1xf32> to vector<32x128xf32>
    %16 = arith.mulf %6, %15 : vector<32x128xf32>
    %c0_5 = arith.constant 0 : index
    %c0_6 = arith.constant 0 : index
    %17 = vector.load %arg2[%c0_5, %c0_6] : memref<1x128xf32, #tpu.memory_space<vmem>>, vector<1x128xf32>
    %18 = vector.broadcast %17 : vector<1x128xf32> to vector<32x128xf32>
    %19 = arith.mulf %16, %18 : vector<32x128xf32>
    %c0_7 = arith.constant 0 : index
    %c0_8 = arith.constant 0 : index
    %20 = vector.load %arg3[%c0_7, %c0_8] : memref<1x128xf32, #tpu.memory_space<vmem>>, vector<1x128xf32>
    %21 = vector.broadcast %20 : vector<1x128xf32> to vector<32x128xf32>
    %22 = arith.addf %19, %21 : vector<32x128xf32>
    %c0_9 = arith.constant 0 : index
    %c0_10 = arith.constant 0 : index
    %23 = vector.load %arg4[%c0_9, %c0_10] : memref<128x128xf32, #tpu.memory_space<vmem>>, vector<128x128xf32>
    %cst_11 = arith.constant dense<0.000000e+00> : vector<32x128xf32>
    %24 = tpu.matmul %22, %23, %cst_11 {dimension_numbers = #tpu.dot_dimension_numbers<[1], [0], [0], [1], [0, 0, 1, 1], [], []>} : vector<32x128xf32>, vector<128x128xf32>, vector<32x128xf32> -> vector<32x128xf32>
    %c0_12 = arith.constant 0 : index
    %c0_13 = arith.constant 0 : index
    %25 = vector.load %arg5[%c0_12, %c0_13] : memref<1x128xf32, #tpu.memory_space<vmem>>, vector<1x128xf32>
    %26 = vector.broadcast %25 : vector<1x128xf32> to vector<32x128xf32>
    %27 = arith.addf %24, %26 : vector<32x128xf32>
    %c0_14 = arith.constant 0 : index
    %c0_15 = arith.constant 0 : index
    %28 = vector.load %arg6[%c0_14, %c0_15] : memref<32x128xf32, #tpu.memory_space<vmem>>, vector<32x128xf32>
    tpu.vector_store %arg6[%c0_14, %c0_15], %27 {strides = array<i32>} : memref<32x128xf32, #tpu.memory_space<vmem>>, vector<32x128xf32>,
    return
  }
  func.func @transform_0(%arg0: i32) -> (i32, i32) {
    %c0_i32 = arith.constant 0 : i32
    %c0_i32_0 = arith.constant 0 : i32
    return %arg0, %c0_i32 : i32, i32
  }
  func.func @transform_1(%arg0: i32) -> (i32, i32) {
    %c0_i32 = arith.constant 0 : i32
    %c0_i32_0 = arith.constant 0 : i32
    %c0_i32_1 = arith.constant 0 : i32
    return %c0_i32, %c0_i32_0 : i32, i32
  }
  func.func @transform_2(%arg0: i32) -> (i32, i32) {
    %c0_i32 = arith.constant 0 : i32
    %c0_i32_0 = arith.constant 0 : i32
    %c0_i32_1 = arith.constant 0 : i32
    return %c0_i32, %c0_i32_0 : i32, i32
  }
  func.func @transform_3(%arg0: i32) -> (i32, i32) {
    %c0_i32 = arith.constant 0 : i32
    %c0_i32_0 = arith.constant 0 : i32
    %c0_i32_1 = arith.constant 0 : i32
    return %c0_i32, %c0_i32_0 : i32, i32
  }
  func.func @transform_4(%arg0: i32) -> (i32, i32) {
    %c0_i32 = arith.constant 0 : i32
    %c0_i32_0 = arith.constant 0 : i32
    %c0_i32_1 = arith.constant 0 : i32
    return %c0_i32, %c0_i32_0 : i32, i32
  }
  func.func @transform_5(%arg0: i32) -> (i32, i32) {
    %c0_i32 = arith.constant 0 : i32
    %c0_i32_0 = arith.constant 0 : i32
    return %arg0, %c0_i32 : i32, i32
  }
}

</mosaic_0001>

<bundles_post_ra>
// kernel: tpu_custom_call.1
= control target key start
LH: loop header
LB: loop body
LE: loop exit
PB: predicated region body
PF: predicated region fallthrough
CT: control target
= control target key end

     0   :  { %s1081_s0 = inlined_call_operand.hbm [shape: f32[128,128], index: 0, kind: input, shape index: {}]   ;;  %s1082_s1 = inlined_call_operand.hbm [shape: f32[1,128], index: 1, kind: input, shape index: {}]   ;;  %s1083_s2 = inlined_call_operand.vmem [shape: f32[1,128], index: 2, kind: input, shape index: {}]   ;;  %s1084_s3 = inlined_call_operand.hbm [shape: f32[128,128], index: 3, kind: input, shape index: {}]   ;;  %s1085_s4 = inlined_call_operand.vmem [shape: f32[1,128], index: 4, kind: input, shape index: {}]   ;;  %s1086_s5 = inlined_call_operand.hbm [shape: f32[128,128], index: 5, kind: output, shape index: {}]  }
   0x1   :  { %1088 = sst [smem:[#allocation14_spill]] %s1082_s1 }
   0x2   :  { %1089 = sst [smem:[#allocation15_spill]] %s1084_s3 }
   0x3   :  { %10 = vsyncpa [#allocation3], 0 }
   0x4   :  { %12 = vsyncpa [#allocation3 + $0x1], 0 }
   0x5   :  { %13 = vsyncpa [#allocation6], 0 }
   0x6   :  { %14 = vsyncpa [#allocation4], 0 }
   0x7   :  { %16 = vsyncpa [#allocation4 + $0x1], 0  ;;  %s898_s18 = smov 0   ;;  %s900_s19 = smov 0  }
   0x8   :  { %s902_s20 = smov 0   ;;  %s904_s21 = smov 0  }
   0x9 LB: > { %1090 = sst [smem:[#allocation12_spill]] %s855_s20  ;;  %s919_s22 = sadd.s32 4294967295, %s859_s21   ;;  %s859_s21 = sphi %s904_s21, %s1104_s21   ;;  %s855_s20 = sphi %s902_s20, %s1101_s20   ;;  %s851_s19 = sphi %s900_s19, %s1103_s19   ;;  %s847_s18 = sphi %s898_s18, %s1102_s18  }
   0xa   : > { %s546_s23 = sadd.s32 4294967294, %s859_s21   ;;  %s923_s24 = sadd.s32 1, %s859_s21  }
   0xb   : > { %s29_s25 = sadd.s32 1, %s855_s20  ;;  %s26_s26 = ssub.s32 %s859_s21, %s923_s24 }
   0xc   : > { %p36_p0 = scmp.ne.s32.totalorder %s855_s20, %s851_s19  ;;  %p27_p1 = scmp.eq.s32.totalorder %s26_s26, 0 }
   0xd   : > { %p37_p2 = scmp.eq.s32.totalorder %s859_s21, 0  ;;  %p42_p3 = scmp.ne.s32.totalorder %s851_s19, %s847_s18 }
   0xe   : > { %p43_p4 = scmp.eq.s32.totalorder %s919_s22, 0  ;;  %p150_p7 = scmp.eq.s32.totalorder %s919_s22, 3 }
   0xf   : > { %s935_s27 = scalar_select %p27_p1, %s855_s20, %s29_s25  }
  0x10   : > { %p937_p5 = por %p37_p2, %p36_p0  ;;  %p943_p6 = por %p43_p4, %p42_p3 }
  0x11   : > { %1091 = sst [smem:[#allocation13_spill]] %s935_s27  ;;  %p156_p8 = scmp.eq.s32.totalorder %s546_s23, 3 }
  0x12   : > { %p547_p9 = scmp.ge.s32.totalorder %s859_s21, 1  ;;  %p163_p10 = scmp.lt.s32.totalorder %s859_s21, 5 }
  0x13   : > { %p950_p11 = por %p150_p7, %p36_p0  ;;  %p954_p12 = por %p156_p8, %p42_p3 }
  0x14   : > { %p958_p13 = pnand %p547_p9, %p163_p10  ;;  %s1097_s1 = sld [smem:[#allocation14_spill]] }
  0x15   : > { %s861_s11 = smov [#allocation5]   ;;  %p643_p2 = scmp.lt.s32.totalorder %s859_s21, 4 }
  0x16   : > { %p626_p1 = pneg %p958_p13  ;;  %s177_s12 = sshll.u32 %s861_s11, 4  ;;  %s178_s12 = int_to_ptr.vmem [resolvable:$true] %s177_s12 }
  0x17   : > { %s1098_s3 = sld [smem:[#allocation15_spill]]  ;;  %p975_p3 = pnand %p643_p2, %p937_p5 }
  0x18   : > { %p627_p0 = pnand %p626_p1, %p43_p4  ;;  %s862_s17 = smov [#allocation7]  }
  0x19   : > { %s191_s23 = sshll.u32 %s862_s17, 4  ;;  %s208_s25 = sand.u32 1, %s855_s20   ;;  %s192_s23 = int_to_ptr.vmem [resolvable:$true] %s191_s23 }
  0x1a   : > { %s175_s10 = sshll.u32 %s1097_s1, 4  ;;  %s863_s26 = smov 128   ;;  %s176_s10 = int_to_ptr.hbm [resolvable:$true] %s175_s10 }
  0x1b   : > { %629 = dma.hbm_to_vmem [thread:$0]  (!%p627_p0), %s176_s10, 16, %s178_s12, [#allocation6]  }
  0x1c   : > { %s864_s8 = smov 8   ;;  %s551_s9 = sshll.u32 %s208_s25, 5 }
  0x1d   : > { %s189_s15 = sshll.u32 %s1098_s3, 4  ;;  %s564_s11 = sshll.u32 %s859_s21, 5  ;;  %s190_s15 = int_to_ptr.hbm [resolvable:$true] %s189_s15 }
  0x1e   : > { %632 = dma.hbm_to_vmem [thread:$0]  (!%p627_p0), %s190_s15, 2048, %s192_s23, [#allocation6], %s863_s26, %s863_s26, %s864_s8  }
  0x1f   : > { %s217_s14 = scalar_lea.hbm %s1081_s0, %s564_s11  ;;  %s212_s10 = scalar_lea.vmem [#allocation2], %s551_s9 }
  0x20   : > { %s220_s28 = sshll.u32 %s212_s10, 4  ;;  %s218_s12 = sshll.u32 %s217_s14, 4  ;;  %s221_s28 = int_to_ptr.vmem [resolvable:$true] %s220_s28  ;;  %s219_s12 = int_to_ptr.hbm [resolvable:$true] %s218_s12 }
  0x21   : > { %s209_s3 = scalar_lea.sflag [#allocation3], %s208_s25  ;;  %s759_s27 = sshra.s32 %s219_s12, 4  ;;  %s760_s27 = int_to_ptr.hbm [resolvable:$true] %s759_s27 }
  0x22   : > { %s761_s17 = scalar_lea.hbm %s760_s27, 32  ;;  %p763_p7 = pneg %p975_p3 }
  0x23   : > { %p762_p5 = scmp.ne.s32.totalorder %s760_s27, %s761_s17  ;;  %s766_s20 = scalar_lea.hbm %s1081_s0, 128 }
  0x24   : > { %p767_p10 = scmp.lt.s32.totalorder %s760_s27, %s1081_s0  ;;  %p768_p1 = scmp.lt.s32.totalorder %s766_s20, %s761_s17 }
  0x25   : > { %p764_p8 = pnand %p763_p7, %p762_p5 }
  0x26   : > { %p769_p0 = por %p768_p1, %p767_p10 }
  0x27   : > { %p765_p9 = pneg %p764_p8 }
  0x29   : > { %p770_p2 = pnand %p769_p0, %p765_p9 }
  0x2b   : > { %773 = shalt.err (!%p770_p2)
}
  0x2c   : > { %636 = dma.hbm_to_vmem [thread:$0]  (!%p975_p3), %s219_s12, 512, %s221_s28, %s209_s3, %s863_s26, %s863_s26, %s864_s8  }
  0x2d   : > { %232 = sbr.rel (%p958_p13) target bundleno = 466 (0x1d2), region = 40  ;;  %s997_s25 = sand.u32 (!%p958_p13), 1, %s851_s19  }
  0x2e   : > { %s555_s9 = sshll.u32 (!%p958_p13), %s997_s25, 5  ;;  %s235_s13 = scalar_lea.sflag (!%p958_p13), [#allocation3], %s997_s25 }
  0x2f   : > { %s238_s20 = scalar_lea.vmem (!%p958_p13), [#allocation2], %s555_s9 }
  0x32   : > { %834 = dma.done.wait (%p943_p6), %s235_s13, 512  }
  0x33   : > { %836 = vsyncadd (%p943_p6), %s235_s13, 4294966784 }
  0x34   : > { %838 = dma.done.wait (%p43_p4), [#allocation6], 2064  }
  0x35   : > { %840 = vsyncadd (%p43_p4), [#allocation6], 4294965232  ;;  %v280_v0 = vld [vmem:[%s238_s20 + $0x10] sm:$0xff]  ;;  %v278_v1 = vld [vmem:[%s238_s20] sm:$0xff]  ;;  %v865_v4 = vmov 128.0   ;;  %s275_s16 = scalar_lea.vmem [#allocation8], %s555_s9 }
  0x36   : > { %286 = vadd.xlane.f32.xlu0 %v280_v0  ;;  %282 = vadd.xlane.f32.xlu1 %v278_v1  ;;  %v281_v2 = vld [vmem:[%s238_s20 + $0x18] sm:$0xff]  ;;  %v279_v3 = vld [vmem:[%s238_s20 + $0x8] sm:$0xff]  ;;  %689 = vrcp.f32 %v865_v4  ;;  %s565_s26 = sshll.u32 %s919_s22, 5  ;;  %s451_s28 = sshll.u32 %s275_s16, 4  ;;  %s452_s28 = int_to_ptr.vmem [resolvable:$true] %s451_s28 }
  0x37   : > { %v400_v7 = vld [vmem:[#allocation7 + $0x78] sm:$0xff]  ;;  %v399_v8 = vld [vmem:[#allocation7 + $0x70] sm:$0xff]  ;;  %v398_v29 = vld [vmem:[#allocation7 + $0x68] sm:$0xff]  ;;  %s450_s10 = scalar_lea.hbm %s1086_s5, %s565_s26  ;;  %s439_s17 = scalar_lea.sflag [#allocation4], %s997_s25 }
  0x38   : > { %405 = vmatpush.msra.mxu0 %v400_v7  ;;  %567 = vmatpush.msra.mxu2 %v400_v7  ;;  %v397_v30 = vld [vmem:[#allocation7 + $0x60] sm:$0xff]  ;;  %v396_v31 = vld [vmem:[#allocation7 + $0x58] sm:$0xff]  ;;  %v395_v32 = vld [vmem:[#allocation7 + $0x50] sm:$0xff]  ;;  %s453_s12 = sshll.u32 %s450_s10, 4  ;;  %s809_s11 = scalar_lea.hbm %s1086_s5, 128  ;;  %s454_s12 = int_to_ptr.hbm [resolvable:$true] %s453_s12 }
  0x39   : > { %566 = vmatpush.msra.mxu1 %v400_v7  ;;  %568 = vmatpush.msra.mxu3 %v400_v7  ;;  %v394_v33 = vld [vmem:[#allocation7 + $0x48] sm:$0xff]  ;;  %v393_v34 = vld [vmem:[#allocation7 + $0x40] sm:$0xff]  ;;  %v392_v35 = vld [vmem:[#allocation7 + $0x38] sm:$0xff]  ;;  %s803_s22 = sshra.s32 %s454_s12, 4  ;;  %s804_s22 = int_to_ptr.hbm [resolvable:$true] %s803_s22 }
  0x3a   : > { %406 = vmatpush.msra.mxu0 %v399_v8  ;;  %570 = vmatpush.msra.mxu2 %v399_v8  ;;  %v391_v36 = vld [vmem:[#allocation7 + $0x30] sm:$0xff]  ;;  %v390_v37 = vld [vmem:[#allocation7 + $0x28] sm:$0xff]  ;;  %v389_v38 = vld [vmem:[#allocation7 + $0x20] sm:$0xff]  ;;  %s805_s15 = scalar_lea.hbm %s804_s22, 32  ;;  %p810_p3 = scmp.lt.s32.totalorder %s804_s22, %s1086_s5 }
  0x3b   : > { %569 = vmatpush.msra.mxu1 %v399_v8  ;;  %571 = vmatpush.msra.mxu3 %v399_v8  ;;  %v388_v39 = vld [vmem:[#allocation7 + $0x18] sm:$0xff]  ;;  %v387_v40 = vld [vmem:[#allocation7 + $0x10] sm:$0xff]  ;;  %v386_v41 = vld [vmem:[#allocation7 + $0x8] sm:$0xff]  ;;  %p806_p4 = scmp.ne.s32.totalorder %s804_s22, %s805_s15  ;;  %p811_p5 = scmp.lt.s32.totalorder %s809_s11, %s805_s15 }
  0x3c   : > { %v690_v5 = vpop.eup %689  ;;  %407 = vmatpush.msra.mxu0 %v398_v29  ;;  %573 = vmatpush.msra.mxu2 %v398_v29  ;;  %v385_v42 = vld [vmem:[#allocation7] sm:$0xff]  ;;  %v686_v7 = vld [vmem:[#allocation5] ss:$0 sm:$0xff] }
  0x3d   : > { %v291_v6 = vmul.f32 128.0, %v690_v5  ;;  %vm295_vm0 = vweird.f32 %v690_v5  ;;  %572 = vmatpush.msra.mxu1 %v398_v29  ;;  %574 = vmatpush.msra.mxu3 %v398_v29  ;;  %p807_p6 = pnand %p806_p4, %p950_p11  ;;  %p812_p7 = por %p811_p5, %p810_p3 }
  0x3e   : > { %288 = vadd.xlane.f32.xlu0 %v281_v2  ;;  %284 = vadd.xlane.f32.xlu1 %v279_v3 }
  0x3f   : > { %v292_v9 = vsub.f32 1.0, %v291_v6  ;;  %408 = vmatpush.msra.mxu0 %v397_v30  ;;  %576 = vmatpush.msra.mxu2 %v397_v30  ;;  %p808_p13 = pneg %p807_p6 }
  0x40   : > { %575 = vmatpush.msra.mxu1 %v397_v30  ;;  %577 = vmatpush.msra.mxu3 %v397_v30 }
  0x41   : > { %v293_v10 = vmul.f32 %v690_v5, %v292_v9  ;;  %409 = vmatpush.msra.mxu0 %v396_v31  ;;  %579 = vmatpush.msra.mxu2 %v396_v31  ;;  %p813_p8 = pnand %p812_p7, %p808_p13 }
  0x42   : > { %578 = vmatpush.msra.mxu1 %v396_v31  ;;  %580 = vmatpush.msra.mxu3 %v396_v31 }
  0x43   : > { %v294_v11 = vadd.f32 %v690_v5, %v293_v10  ;;  %410 = vmatpush.msra.mxu0 %v395_v32  ;;  %582 = vmatpush.msra.mxu2 %v395_v32 }
  0x44   : > { %581 = vmatpush.msra.mxu1 %v395_v32  ;;  %583 = vmatpush.msra.mxu3 %v395_v32 }
  0x45   : > { %v1011_v12 = vsel %vm295_vm0, %v690_v5, %v294_v11  ;;  %411 = vmatpush.msra.mxu0 %v394_v33  ;;  %585 = vmatpush.msra.mxu2 %v394_v33 }
  0x46   : > { %584 = vmatpush.msra.mxu1 %v394_v33  ;;  %586 = vmatpush.msra.mxu3 %v394_v33 }
  0x47   : > { %412 = vmatpush.msra.mxu0 %v393_v34  ;;  %588 = vmatpush.msra.mxu2 %v393_v34 }
  0x48   : > { %587 = vmatpush.msra.mxu1 %v393_v34  ;;  %589 = vmatpush.msra.mxu3 %v393_v34 }
  0x49   : > { %413 = vmatpush.msra.mxu0 %v392_v35  ;;  %591 = vmatpush.msra.mxu2 %v392_v35 }
  0x4a   : > { %590 = vmatpush.msra.mxu1 %v392_v35  ;;  %592 = vmatpush.msra.mxu3 %v392_v35  ;;  %v688_v35 = vld [vmem:[%s1085_s4] ss:$0 sm:$0xff] }
  0x4b   : > { %414 = vmatpush.msra.mxu0 %v391_v36  ;;  %594 = vmatpush.msra.mxu2 %v391_v36 }
  0x4c   : > { %593 = vmatpush.msra.mxu1 %v391_v36  ;;  %595 = vmatpush.msra.mxu3 %v391_v36 }
  0x4d   : > { %415 = vmatpush.msra.mxu0 %v390_v37  ;;  %597 = vmatpush.msra.mxu2 %v390_v37 }
  0x4e   : > { %596 = vmatpush.msra.mxu1 %v390_v37  ;;  %598 = vmatpush.msra.mxu3 %v390_v37 }
  0x4f   : > { %416 = vmatpush.msra.mxu0 %v389_v38  ;;  %600 = vmatpush.msra.mxu2 %v389_v38 }
  0x50   : > { %599 = vmatpush.msra.mxu1 %v389_v38  ;;  %601 = vmatpush.msra.mxu3 %v389_v38 }
  0x51   : > { %417 = vmatpush.msra.mxu0 %v388_v39  ;;  %603 = vmatpush.msra.mxu2 %v388_v39 }
  0x52   : > { %602 = vmatpush.msra.mxu1 %v388_v39  ;;  %604 = vmatpush.msra.mxu3 %v388_v39 }
  0x53   : > { %418 = vmatpush.msra.mxu0 %v387_v40  ;;  %606 = vmatpush.msra.mxu2 %v387_v40 }
  0x54   : > { %605 = vmatpush.msra.mxu1 %v387_v40  ;;  %607 = vmatpush.msra.mxu3 %v387_v40 }
  0x55   : > { %419 = vmatpush.msra.mxu0 %v386_v41  ;;  %609 = vmatpush.msra.mxu2 %v386_v41 }
  0x56   : > { %608 = vmatpush.msra.mxu1 %v386_v41  ;;  %610 = vmatpush.msra.mxu3 %v386_v41 }
  0x57   : > { %420 = vmatpush.msra.mxu0 %v385_v42  ;;  %612 = vmatpush.msra.mxu2 %v385_v42 }
  0x58   : > { %611 = vmatpush.msra.mxu1 %v385_v42  ;;  %613 = vmatpush.msra.mxu3 %v385_v42 }
  0xa9   : > { %v287_v13 = vpop.xlane.xlu0 %286  ;;  %v283_v14 = vpop.xlane.xlu1 %282 }
  0xaa   : > { %v299_v15 = vmul.f32 %v1011_v12, %v287_v13  ;;  %v297_v16 = vmul.f32 %v1011_v12, %v283_v14 }
  0xac   : > { %v1015_v17 = vsub.f32 %v278_v1, %v297_v16  ;;  %v1017_v18 = vsub.f32 %v280_v0, %v299_v15 }
  0xae   : > { %v307_v19 = vmul.f32 %v1017_v18, %v1017_v18  ;;  %v305_v20 = vmul.f32 %v1015_v17, %v1015_v17 }
  0xb0   : > { %313 = vadd.xlane.f32.xlu2 %v307_v19  ;;  %309 = vadd.xlane.f32.xlu0 %v305_v20 }
  0xb1   : > { %v289_v21 = vpop.xlane.xlu0 %288  ;;  %v285_v22 = vpop.xlane.xlu1 %284 }
  0xb2   : > { %v300_v23 = vmul.f32 %v1011_v12, %v289_v21  ;;  %v298_v24 = vmul.f32 %v1011_v12, %v285_v22 }
  0xb4   : > { %v1025_v25 = vsub.f32 %v281_v2, %v300_v23  ;;  %v1027_v26 = vsub.f32 %v279_v3, %v298_v24 }
  0xb6   : > { %v308_v27 = vmul.f32 %v1025_v25, %v1025_v25  ;;  %v306_v28 = vmul.f32 %v1027_v26, %v1027_v26 }
  0xb8   : > { %315 = vadd.xlane.f32.xlu2 %v308_v27  ;;  %311 = vadd.xlane.f32.xlu1 %v306_v28 }
 0x123   : > { %v314_v43 = vpop.xlane.xlu2 %313  ;;  %v310_v44 = vpop.xlane.xlu0 %309 }
 0x124   : > { %v319_v45 = vmul.f32 %v314_v43, %v1011_v12  ;;  %v317_v46 = vmul.f32 %v310_v44, %v1011_v12 }
 0x126   : > { %v323_v47 = vadd.f32 1e-05, %v319_v45  ;;  %v321_v48 = vadd.f32 1e-05, %v317_v46 }
 0x128   : > { %691 = vrsqrt.f32 %v323_v47  ;;  %vm331_vm2 = vweird.f32 %v321_v48  ;;  %vm351_vm4 = vweird.f32 %v323_v47 }
 0x129   : > { %693 = vrsqrt.f32 %v321_v48 }
 0x12b   : > { %v316_v49 = vpop.xlane.xlu2 %315  ;;  %v312_v50 = vpop.xlane.xlu1 %311 }
 0x12c   : > { %v320_v51 = vmul.f32 %v316_v49, %v1011_v12  ;;  %v318_v52 = vmul.f32 %v312_v50, %v1011_v12  ;;  %v687_v12 = vld [vmem:[%s1083_s2] ss:$0 sm:$0xff] }
 0x12e   : > { %v692_v53 = vpop.eup %691  ;;  %v324_v54 = vadd.f32 1e-05, %v320_v51  ;;  %v322_v55 = vadd.f32 1e-05, %v318_v52 }
 0x12f   : > { %v694_v56 = vpop.eup %693  ;;  %v346_v57 = vmul.f32 %v692_v53, %v323_v47  ;;  %vm352_vm1 = vweird.f32 %v692_v53 }
 0x130   : > { %v326_v58 = vmul.f32 %v694_v56, %v321_v48  ;;  %695 = vrsqrt.f32 %v324_v54  ;;  %vm332_vm3 = vweird.f32 %v694_v56  ;;  %vm353_vm5 = vmor %vm351_vm4, %vm352_vm1  ;;  %vm341_vm8 = vweird.f32 %v322_v55 }
 0x131   : > { %v347_v59 = vmul.f32 %v692_v53, %v346_v57  ;;  %697 = vrsqrt.f32 %v322_v55  ;;  %vm333_vm6 = vmor %vm331_vm2, %vm332_vm3  ;;  %vm361_vm10 = vweird.f32 %v324_v54 }
 0x132   : > { %v327_v60 = vmul.f32 %v694_v56, %v326_v58 }
 0x133   : > { %v348_v61 = vmul.f32 0.5, %v347_v59 }
 0x134   : > { %v328_v62 = vmul.f32 0.5, %v327_v60 }
 0x135   : > { %v349_v63 = vsub.f32 1.5, %v348_v61 }
 0x136   : > { %v696_v0 = vpop.eup %695  ;;  %v329_v1 = vsub.f32 1.5, %v328_v62 }
 0x137   : > { %v698_v2 = vpop.eup %697  ;;  %v350_v3 = vmul.f32 %v692_v53, %v349_v63  ;;  %v356_v4 = vmul.f32 %v696_v0, %v324_v54  ;;  %vm362_vm7 = vweird.f32 %v696_v0 }
 0x138   : > { %v330_v5 = vmul.f32 %v694_v56, %v329_v1  ;;  %v336_v6 = vmul.f32 %v698_v2, %v322_v55  ;;  %vm342_vm9 = vweird.f32 %v698_v2  ;;  %vm363_vm11 = vmor %vm361_vm10, %vm362_vm7 }
 0x139   : > { %v357_v8 = vmul.f32 %v696_v0, %v356_v4  ;;  %v354_v9 = vsel %vm353_vm5, %v692_v53, %v350_v3  ;;  %vm343_vm12 = vmor %vm341_vm8, %vm342_vm9 }
 0x13a   : > { %v337_v10 = vmul.f32 %v698_v2, %v336_v6  ;;  %v334_v11 = vsel %vm333_vm6, %v694_v56, %v330_v5  ;;  %v367_v13 = vmul.f32 %v354_v9, %v1017_v18 }
 0x13b   : > { %v358_v14 = vmul.f32 0.5, %v357_v8  ;;  %v365_v15 = vmul.f32 %v334_v11, %v1015_v17 }
 0x13c   : > { %v338_v16 = vmul.f32 0.5, %v337_v10  ;;  %v375_v19 = vmul.f32 %v686_v7, %v367_v13 }
 0x13d   : > { %v359_v20 = vsub.f32 1.5, %v358_v14  ;;  %v373_v21 = vmul.f32 %v686_v7, %v365_v15 }
 0x13e   : > { %v339_v22 = vsub.f32 1.5, %v338_v16  ;;  %v383_v23 = vadd.f32 %v687_v12, %v375_v19 }
 0x13f   : > { %v360_v24 = vmul.f32 %v696_v0, %v359_v20  ;;  %v381_v27 = vadd.f32 %v687_v12, %v373_v21 }
 0x140   : > { %v340_v28 = vmul.f32 %v698_v2, %v339_v22  ;;  %427 = vmatmul.f32.vlgmr.msra.gmra.mxu2 %v383_v23 }
 0x141   : > { %421 = vmatmul.f32.vlgmr.msra.gmra.mxu0 %v381_v27  ;;  %v364_v17 = vsel %vm363_vm11, %v696_v0, %v360_v24 }
 0x142   : > { %v344_v18 = vsel %vm343_vm12, %v698_v2, %v340_v28  ;;  %v368_v29 = vmul.f32 %v364_v17, %v1025_v25 }
 0x143   : > { %v366_v30 = vmul.f32 %v344_v18, %v1027_v26 }
 0x144   : > { %v376_v31 = vmul.f32 %v686_v7, %v368_v29 }
 0x145   : > { %v374_v32 = vmul.f32 %v686_v7, %v366_v30 }
 0x146   : > { %v384_v33 = vadd.f32 %v687_v12, %v376_v31 }
 0x147   : > { %v382_v34 = vadd.f32 %v687_v12, %v374_v32 }
 0x148   : > { %430 = vmatmul.f32.vlgmr.msra.gmra.mxu3 %v384_v33 }
 0x149   : > { %424 = vmatmul.f32.vlgmr.msra.gmra.mxu1 %v382_v34 }
 0x1be   : > { %v422_v36 = vpop.f32.mrf.mxu0 }
 0x1bf   : > { %v423_v37 = vadd.f32 %v688_v35, %v422_v36 }
 0x1c1   : > { %434 = vst [vmem:[%s275_s16] sm:$0xff] %v423_v37 }
 0x1c3   : > { %v428_v25 = vpop.f32.mrf.mxu2 }
 0x1c4   : > { %v429_v38 = vadd.f32 %v688_v35, %v428_v25 }
 0x1c6   : > { %436 = vst [vmem:[%s275_s16 + $0x10] sm:$0xff] %v429_v38  ;;  %v425_v26 = vpop.f32.mrf.mxu1 }
 0x1c7   : > { %v426_v39 = vadd.f32 %v688_v35, %v425_v26 }
 0x1c9   : > { %435 = vst [vmem:[%s275_s16 + $0x8] sm:$0xff] %v426_v39 }
 0x1cb   : > { %v431_v40 = vpop.f32.mrf.mxu3 }
 0x1cc   : > { %v432_v41 = vadd.f32 %v688_v35, %v431_v40 }
 0x1ce   : > { %437 = vst [vmem:[%s275_s16 + $0x18] sm:$0xff] %v432_v41 }
 0x1cf   : > { %816 = shalt.err (!%p813_p8)
}
 0x1d0   : > { %s866_s25 = smov 128   ;;  %s867_s20 = smov 8  }
 0x1d1   : > { %624 = dma.vmem_to_hbm [thread:$0]  (%p950_p11), %s452_s28, 512, %s454_s12, %s439_s17, %s866_s25, %s866_s25, %s867_s20  }
 0x1d2 PF: > { %p646_p9 = scmp.ge.s32.totalorder %s859_s21, 2  ;;  %s468_s3 = sand.u32 1, %s847_s18  }
 0x1d3   : > { %s469_s27 = scalar_lea.sflag [#allocation4], %s468_s3 }
 0x1d4   : > { %p638_p10 = pnand %p646_p9, %p954_p12 }
 0x1d6   : > { %p639_p1 = pneg %p638_p10 }
 0x1d8   : > { %842 = dma.done.wait (%p639_p1), %s469_s27, 512  }
 0x1d9   : > { %844 = vsyncadd (%p639_p1), %s469_s27, 4294966784  ;;  %s1100_s29 = sld [smem:[#allocation12_spill]]  ;;  %p19_p0 = scmp.ge.s32.totalorder %s923_s24, 6  }
 0x1da   : > { %s1101_s20 = sld [smem:[#allocation13_spill]]  ;;  %s1102_s18 = smov %s851_s19 }
 0x1db   : > { %s1104_s21 = smov %s923_s24  ;;  %21 = sbr.rel (!%p19_p0) target bundleno = 9 (0x9), region = 93 }
 0x1df   : > { %s1103_s19 = smov %s1100_s29 }
 0x1e0   :  { %475 = vsyncpa [#allocation3], 1 }
 0x1e1   :  { %477 = vsyncpa [#allocation3 + $0x1], 1 }
 0x1e2   :  { %478 = vsyncpa [#allocation6], 1 }
 0x1e3   :  { %479 = vsyncpa [#allocation4], 1 }
 0x1e4   :  { %481 = vsyncpa [#allocation4 + $0x1], 1 }

</bundles_post_ra>
